<compile_context>
chip_gen: v7x
topology: tpu7x:2x2x1
jax: 0.10.0
libtpu: 0.0.40
codegen_flags: <defaults>
</compile_context>

<pallas_src>
import functools
import math

import jax
import jax.numpy as jnp
from jax.experimental import pallas as pl
from jax.experimental.pallas import tpu as pltpu

_LANE = 128
_STEP_BYTES = 8 << 20          # combined pred+label HBM bytes per grid step
_VMEM_LIMIT = 32 << 20         # 2 inputs x 2 buffers x ~4 MiB + scratch


def _mse_kernel(pred_ref, label_ref, out_ref, acc_ref,
                *, inv_n, rows_per_sample, tile_rows, needs_row_mask):
    """Blocks: pred/label (TB, TR, 128); out (TB, 1, 1); acc (TB, 128) f32."""
    k = pl.program_id(1)
    last_k = pl.num_programs(1) - 1

    @pl.when(k == 0)
    def _():
        acc_ref[...] = jnp.zeros_like(acc_ref)

    # Hot path: stream native dtype, upcast in-register, square, and reduce
    # only over the row (sublane) axis into per-lane partial sums — no
    # cross-lane XLU reduce and no scalar store per step.
    p = pred_ref[...].astype(jnp.float32)
    l = label_ref[...].astype(jnp.float32)
    d = p - l
    sq = d * d

    if needs_row_mask:
        # Only the last tile along the reduction axis is partial; keep the
        # mask off the hot tiles.
        @pl.when(k != last_k)
        def _():
            acc_ref[...] += jnp.sum(sq, axis=1)

        @pl.when(k == last_k)
        def _():
            rows = k * tile_rows + jax.lax.broadcasted_iota(jnp.int32, sq.shape, 1)
            acc_ref[...] += jnp.sum(jnp.where(rows < rows_per_sample, sq, 0.0),
                                    axis=1)
    else:
        acc_ref[...] += jnp.sum(sq, axis=1)

    # Finalize: one cross-lane reduce + 1/N scale per sample.
    @pl.when(k == last_k)
    def _():
        total = jnp.sum(acc_ref[...], axis=-1)                    # (TB,)
        out_ref[...] = (total * jnp.float32(inv_n)).reshape(out_ref.shape)


def _mse_lane_aligned(p, l, true_n, *, step_bytes=_STEP_BYTES):
    """p, l: (B, Npad) with Npad % 128 == 0.  Returns (B,) f32 means over true_n."""
    B, npad = p.shape
    R = npad // _LANE
    p = p.reshape(B, R, _LANE)                     # layout-preserving views
    l = l.reshape(B, R, _LANE)

    bytes_per_row = _LANE * (p.dtype.itemsize + l.dtype.itemsize)
    tr = max(8, ((step_bytes // bytes_per_row) // 8) * 8)

    if R <= tr:
        # Whole per-sample feature fits in one block: pack several samples per
        # grid step so tiny workloads amortize the per-step fixed cost.
        tr = R
        tb = int(max(1, min(B, step_bytes // max(R * bytes_per_row, 1))))
        kt = 1
        needs_row_mask = False
    else:
        tb = 1
        kt = pl.cdiv(R, tr)
        needs_row_mask = (R % tr) != 0
    nb = pl.cdiv(B, tb)

    kernel = functools.partial(
        _mse_kernel,
        inv_n=1.0 / float(true_n),
        rows_per_sample=R,
        tile_rows=tr,
        needs_row_mask=needs_row_mask,
    )

    bytes_accessed = B * npad * (p.dtype.itemsize + l.dtype.itemsize) + B * 4
    cost = pl.CostEstimate(flops=3 * B * int(true_n), transcendentals=0,
                           bytes_accessed=bytes_accessed)

    out = pl.pallas_call(
        kernel,
        out_shape=jax.ShapeDtypeStruct((B, 1, 1), jnp.float32),
        grid_spec=pltpu.PrefetchScalarGridSpec(
            num_scalar_prefetch=0,
            grid=(nb, kt),
            in_specs=[
                pl.BlockSpec((tb, tr, _LANE), lambda b, k: (b, k, 0)),   # pred
                pl.BlockSpec((tb, tr, _LANE), lambda b, k: (b, k, 0)),   # label
            ],
            out_specs=pl.BlockSpec((tb, 1, 1), lambda b, k: (b, 0, 0)),
            scratch_shapes=[pltpu.VMEM((tb, _LANE), jnp.float32)],
        ),
        # TODO(synk): on v7x, use pltpu.CORE_PARALLEL on the batch axis (2 TCs)
        # and sweep pipeline_mode=pl.Buffered(3) on the two input specs.
        compiler_params=pltpu.CompilerParams(
            dimension_semantics=("parallel", "arbitrary"),
            vmem_limit_bytes=_VMEM_LIMIT),
        cost_estimate=cost,
    )(p, l)

    return out[:, 0, 0]


def _mse_tail_kernel(pred_ref, label_ref, out_ref, *, inv_n):
    """Blocks: pred/label (TB, N) with N the full (ragged) feature; out (TB, 1)."""
    p = pred_ref[...].astype(jnp.float32)
    l = label_ref[...].astype(jnp.float32)
    d = p - l
    out_ref[...] = jnp.sum(d * d, axis=1, keepdims=True) * jnp.float32(inv_n)


def _mse_ragged_lane(p, l, n, *, step_bytes=_STEP_BYTES):
    """Feature length not a multiple of 128: single streaming pass with
    full-row blocks (Pallas lane-pads the VMEM tile internally; the ref only
    exposes the real N columns, so no masking or HBM padding is needed)."""
    B = p.shape[0]
    per_sample_bytes = n * (p.dtype.itemsize + l.dtype.itemsize)

    if B * per_sample_bytes <= step_bytes:
        tb = B                                     # full batch dim is always legal
    else:
        tb = int((step_bytes // per_sample_bytes) // 8) * 8
        if tb < 8:
            return None                            # feature too big for this path
    nb = pl.cdiv(B, tb)

    cost = pl.CostEstimate(flops=3 * B * int(n), transcendentals=0,
                           bytes_accessed=B * per_sample_bytes + B * 4)

    out = pl.pallas_call(
        functools.partial(_mse_tail_kernel, inv_n=1.0 / float(n)),
        out_shape=jax.ShapeDtypeStruct((B, 1), jnp.float32),
        grid_spec=pltpu.PrefetchScalarGridSpec(
            num_scalar_prefetch=0,
            grid=(nb,),
            in_specs=[pl.BlockSpec((tb, n), lambda b: (b, 0)),
                      pl.BlockSpec((tb, n), lambda b: (b, 0))],
            out_specs=pl.BlockSpec((tb, 1), lambda b: (b, 0)),
        ),
        compiler_params=pltpu.CompilerParams(
            dimension_semantics=("parallel",),
            vmem_limit_bytes=_VMEM_LIMIT),
        cost_estimate=cost,
    )(p, l)
    return out[:, 0]


def mse_loss(pred, label, *, step_bytes=_STEP_BYTES):
    """Pallas implementation of MSE.forward: per-sample mean((pred - label)^2).

    pred:  (B, ...) float array
    label: any shape reshapable to pred.shape (torch `label.view(pred.size())`)
    returns: (B,) float32
    """
    B = int(pred.shape[0])
    label = jnp.reshape(label, pred.shape)          # label.view(pred.size())
    N = int(math.prod([int(s) for s in pred.shape[1:]])) if pred.ndim > 1 else 1

    p = pred.reshape(B, -1)                         # free reshapes, native dtype
    l = label.reshape(B, -1)

    if N % _LANE == 0:
        return _mse_lane_aligned(p, l, N, step_bytes=step_bytes)

    out = _mse_ragged_lane(p, l, N, step_bytes=step_bytes)
    if out is not None:
        return out

    # Rare fallback: very large per-sample feature whose length is not a
    # multiple of 128.  Zero-pad both operands ((0-0)^2 == 0, and we still
    # divide by the true N) at the cost of one extra HBM pass.
    # TODO(synk): stream the unpadded lane tail with a second masked kernel
    # instead of padding in HBM.
    pad = _LANE - N % _LANE
    p = jnp.pad(p, ((0, 0), (0, pad)))
    l = jnp.pad(l, ((0, 0), (0, pad)))
    return _mse_lane_aligned(p, l, N, step_bytes=step_bytes)


def _reference(pred, label):
    label = jnp.reshape(label, pred.shape)
    d = pred.astype(jnp.float32) - label.astype(jnp.float32)
    return jnp.mean(d * d, axis=tuple(range(1, pred.ndim)))


if __name__ == "__main__":
    key = jax.random.PRNGKey(0)
    k1, k2, k3, k4, k5, k6 = jax.random.split(key, 6)

    # Primary example: (B, C, H, W) = (2, 4, 16, 16), f32 — multi-sample block path.
    B, C, H, W = 2, 4, 16, 16
    pred = jax.random.uniform(k1, (B, C, H, W), dtype=jnp.float32)
    label = jax.random.uniform(k2, (B, C, H, W), dtype=jnp.float32)
    out = jax.block_until_ready(mse_loss(pred, label))
    ref = _reference(pred, label)
    assert out.shape == (B,)
    assert jnp.allclose(out, ref, rtol=1e-5, atol=1e-6), (out, ref)

    # Exercise the tiled reduction path with a ragged last row-tile by forcing
    # a tiny per-step byte budget (tr=8 rows, kt=7, masked last tile).
    pred2 = jax.random.uniform(k3, (2, 3, 18, 128), dtype=jnp.float32)
    label2 = jax.random.uniform(k4, (2, 3, 18, 128), dtype=jnp.float32)
    out2 = jax.block_until_ready(mse_loss(pred2, label2, step_bytes=8 * 1024))
    ref2 = _reference(pred2, label2)
    assert jnp.allclose(out2, ref2, rtol=1e-5, atol=1e-6), (out2, ref2)

    # Exercise the ragged-lane (N % 128 != 0) single-pass path.
    pred3 = jax.random.uniform(k5, (2, 3, 7, 9), dtype=jnp.float32)
    label3 = jax.random.uniform(k6, (2, 3, 7, 9), dtype=jnp.float32)
    out3 = jax.block_until_ready(mse_loss(pred3, label3))
    ref3 = _reference(pred3, label3)
    assert jnp.allclose(out3, ref3, rtol=1e-5, atol=1e-6), (out3, ref3)

    print("KERNEL_OK")
</pallas_src>

<mosaic_0001>
module attributes {stable_mosaic.version = 11 : i64} {
  func.func @_mse_kernel(%arg0: i32, %arg1: i32, %arg2: memref<2x8x128xf32, #tpu.memory_space<vmem>>, %arg3: memref<2x8x128xf32, #tpu.memory_space<vmem>>, %arg4: memref<2x1x1xf32, #tpu.memory_space<vmem>>, %arg5: memref<2x128xf32, #tpu.memory_space<vmem>>) attributes {dimension_semantics = [#tpu.dimension_semantics<parallel>, #tpu.dimension_semantics<arbitrary>], iteration_bounds = array<i64: 1, 1>, scalar_prefetch = 0 : i64, scratch_operands = 1 : i64, tpu.core_type = #tpu.core_type<tc>, window_params = [{transform_indices = @transform_0, window_bounds = array<i64: 2, 8, 128>}, {transform_indices = @transform_1, window_bounds = array<i64: 2, 8, 128>}, {transform_indices = @transform_2, window_bounds = array<i64: 2, 1, 1>}]} {
    %c0_i32 = arith.constant 0 : i32
    %0 = arith.cmpi eq, %arg1, %c0_i32 : i32
    %1 = arith.extui %0 : i1 to i32
    %c0_i32_0 = arith.constant 0 : i32
    %2 = arith.cmpi ne, %1, %c0_i32_0 : i32
    scf.if %2 {
      %cst_12 = arith.constant 0.000000e+00 : f32
      %14 = vector.broadcast %cst_12 : f32 to vector<2x128xf32>
      %c0_13 = arith.constant 0 : index
      %c0_14 = arith.constant 0 : index
      %15 = vector.load %arg5[%c0_13, %c0_14] : memref<2x128xf32, #tpu.memory_space<vmem>>, vector<2x128xf32>
      tpu.vector_store %arg5[%c0_13, %c0_14], %14 {strides = array<i32>} : memref<2x128xf32, #tpu.memory_space<vmem>>, vector<2x128xf32>,
    } else {
    }
    %c0 = arith.constant 0 : index
    %c0_1 = arith.constant 0 : index
    %c0_2 = arith.constant 0 : index
    %3 = vector.load %arg2[%c0, %c0_1, %c0_2] : memref<2x8x128xf32, #tpu.memory_space<vmem>>, vector<2x8x128xf32>
    %c0_3 = arith.constant 0 : index
    %c0_4 = arith.constant 0 : index
    %c0_5 = arith.constant 0 : index
    %4 = vector.load %arg3[%c0_3, %c0_4, %c0_5] : memref<2x8x128xf32, #tpu.memory_space<vmem>>, vector<2x8x128xf32>
    %5 = arith.subf %3, %4 : vector<2x8x128xf32>
    %6 = arith.mulf %5, %5 : vector<2x8x128xf32>
    %c0_6 = arith.constant 0 : index
    %c0_7 = arith.constant 0 : index
    %7 = vector.load %arg5[%c0_6, %c0_7] : memref<2x128xf32, #tpu.memory_space<vmem>>, vector<2x128xf32>
    %cst = arith.constant dense<0.000000e+00> : vector<2x128xf32>
    %8 = vector.multi_reduction <add>, %6, %cst [1] : vector<2x8x128xf32> to vector<2x128xf32>
    %9 = arith.addf %7, %8 : vector<2x128xf32>
    %c0_8 = arith.constant 0 : index
    %c0_9 = arith.constant 0 : index
    %10 = vector.load %arg5[%c0_8, %c0_9] : memref<2x128xf32, #tpu.memory_space<vmem>>, vector<2x128xf32>
    tpu.vector_store %arg5[%c0_8, %c0_9], %9 {strides = array<i32>} : memref<2x128xf32, #tpu.memory_space<vmem>>, vector<2x128xf32>,
    %c0_i32_10 = arith.constant 0 : i32
    %11 = arith.cmpi eq, %arg1, %c0_i32_10 : i32
    %12 = arith.extui %11 : i1 to i32
    %c0_i32_11 = arith.constant 0 : i32
    %13 = arith.cmpi ne, %12, %c0_i32_11 : i32
    scf.if %13 {
      %c0_12 = arith.constant 0 : index
      %c0_13 = arith.constant 0 : index
      %14 = vector.load %arg5[%c0_12, %c0_13] : memref<2x128xf32, #tpu.memory_space<vmem>>, vector<2x128xf32>
      %cst_14 = arith.constant dense<0.000000e+00> : vector<2xf32>
      %15 = vector.multi_reduction <add>, %14, %cst_14 [1] : vector<2x128xf32> to vector<2xf32>
      %cst_15 = arith.constant 9.765625E-4 : f32
      %16 = vector.broadcast %cst_15 : f32 to vector<2xf32>
      %17 = arith.mulf %15, %16 : vector<2xf32>
      %18 = vector.shape_cast %17 : vector<2xf32> to vector<2x1x1xf32>
      %c0_16 = arith.constant 0 : index
      %c0_17 = arith.constant 0 : index
      %c0_18 = arith.constant 0 : index
      %19 = vector.load %arg4[%c0_16, %c0_17, %c0_18] : memref<2x1x1xf32, #tpu.memory_space<vmem>>, vector<2x1x1xf32>
      tpu.vector_store %arg4[%c0_16, %c0_17, %c0_18], %18 {strides = array<i32>} : memref<2x1x1xf32, #tpu.memory_space<vmem>>, vector<2x1x1xf32>,
    } else {
    }
    return
  }
  func.func @transform_0(%arg0: i32, %arg1: i32) -> (i32, i32, i32) {
    %c0_i32 = arith.constant 0 : i32
    %c0_i32_0 = arith.constant 0 : i32
    return %arg0, %arg1, %c0_i32 : i32, i32, i32
  }
  func.func @transform_1(%arg0: i32, %arg1: i32) -> (i32, i32, i32) {
    %c0_i32 = arith.constant 0 : i32
    %c0_i32_0 = arith.constant 0 : i32
    return %arg0, %arg1, %c0_i32 : i32, i32, i32
  }
  func.func @transform_2(%arg0: i32, %arg1: i32) -> (i32, i32, i32) {
    %c0_i32 = arith.constant 0 : i32
    %c0_i32_0 = arith.constant 0 : i32
    %c0_i32_1 = arith.constant 0 : i32
    return %arg0, %c0_i32, %c0_i32_0 : i32, i32, i32
  }
}

</mosaic_0001>

<bundles_post_ra>
// kernel: tpu_custom_call.1
= control target key start
LH: loop header
LB: loop body
LE: loop exit
PB: predicated region body
PF: predicated region fallthrough
CT: control target
= control target key end

     0   :  { %7 = vsyncpa [#allocation4], 0  ;;  %s204_s0 = inlined_call_operand.hbm [shape: f32[2,8,128], index: 0, kind: input, shape index: {}]   ;;  %s205_s1 = inlined_call_operand.hbm [shape: f32[2,8,128], index: 1, kind: input, shape index: {}]   ;;  %s206_s2 = inlined_call_operand.vmem [shape: f32[2,1,1], index: 2, kind: output, shape index: {}]  }
   0x1   :  { %8 = vsyncpa [#allocation6], 0  ;;  %s154_s9 = smov [#allocation3]   ;;  %s106_s13 = scalar_lea.hbm %s204_s0, 256 }
   0x2   :  { %s14_s10 = sshll.u32 %s154_s9, 4  ;;  %p107_p0 = scmp.ne.s32.totalorder %s204_s0, %s106_s13  ;;  %s15_s10 = int_to_ptr.vmem [resolvable:$true] %s14_s10 }
   0x3   :  { %p110_p1 = scmp.lt.u32.totalorder %s106_s13, %s204_s0 }
   0x5   :  { %p112_p2 = pnand %p110_p1, %p107_p0 }
   0x7   :  { %115 = shalt.err (!%p112_p2)
}
   0x8   :  { %s116_s18 = scalar_lea.vmem %s15_s10, 256  ;;  %p121_p4 = scmp.lt.s32.totalorder %s15_s10, %s15_s10 }
   0x9   :  { %p117_p3 = scmp.ne.s32.totalorder %s15_s10, %s116_s18  ;;  %p122_p5 = scmp.lt.s32.totalorder %s116_s18, %s116_s18 }
   0xb   :  { %p123_p6 = por %p122_p5, %p121_p4 }
   0xd   :  { %p124_p7 = pnand %p123_p6, %p117_p3 }
   0xf   :  { %127 = shalt.err (!%p124_p7)
}
  0x10   :  { %s155_s19 = smov 128   ;;  %s156_s20 = smov 8  }
  0x11   :  { %20 = dma.hbm_to_vmem [thread:$0]  %s204_s0, 256, %s15_s10, [#allocation4], %s155_s19, %s155_s19, %s156_s20  }
  0x12   :  { %s157_s23 = smov [#allocation5]   ;;  %s128_s27 = scalar_lea.hbm %s205_s1, 256 }
  0x13   :  { %s26_s24 = sshll.u32 %s157_s23, 4  ;;  %p129_p8 = scmp.ne.s32.totalorder %s205_s1, %s128_s27  ;;  %s27_s24 = int_to_ptr.vmem [resolvable:$true] %s26_s24 }
  0x14   :  { %p132_p9 = scmp.lt.u32.totalorder %s128_s27, %s205_s1 }
  0x16   :  { %p134_p10 = pnand %p132_p9, %p129_p8 }
  0x18   :  { %137 = shalt.err (!%p134_p10)
}
  0x19   :  { %s138_s4 = scalar_lea.vmem %s27_s24, 256  ;;  %p143_p12 = scmp.lt.s32.totalorder %s27_s24, %s27_s24 }
  0x1a   :  { %p139_p11 = scmp.ne.s32.totalorder %s27_s24, %s138_s4  ;;  %p144_p13 = scmp.lt.s32.totalorder %s138_s4, %s138_s4 }
  0x1c   :  { %p145_p0 = por %p144_p13, %p143_p12 }
  0x1e   :  { %p146_p1 = pnand %p145_p0, %p139_p11 }
  0x20   :  { %149 = shalt.err (!%p146_p1)
}
  0x21   :  { %32 = dma.hbm_to_vmem [thread:$0]  %s205_s1, 256, %s27_s24, [#allocation6], %s155_s19, %s155_s19, %s156_s20  }
  0x22   :  { %150 = dma.done.wait [#allocation4], 256  }
  0x23   :  { %151 = vsyncadd [#allocation4], 4294967040 }
  0x24   :  { %152 = dma.done.wait [#allocation6], 256  }
  0x25   :  { %153 = vsyncadd [#allocation6], 4294967040  ;;  %v158_v0 = vmov 0.0   ;;  %v44_v1 = vld [vmem:[#allocation3] sm:$0xff]  ;;  %v45_v2 = vld [vmem:[#allocation3 + $0x8] sm:$0xff]  ;;  %vm67_vm0 = vcmask 1041409   ;;  %v82_v26 = vlaneseq }
  0x26   :  { %43 = vst [vmem:[#allocation2] sm:$0x3] %v158_v0  ;;  %v46_v3 = vld [vmem:[#allocation5] sm:$0xff]  ;;  %v47_v4 = vld [vmem:[#allocation5 + $0x8] sm:$0xff]  ;;  %vm76_vm1 = vcmask 1041408   ;;  %vm92_vm2 = vcmask 0  }
  0x27   :  { %v48_v5 = vsub.f32 %v44_v1, %v46_v3  ;;  %v49_v6 = vsub.f32 %v45_v2, %v47_v4  ;;  %v83_v27 = vshrl.u32 %v82_v26, 7 }
  0x29   :  { %v50_v7 = vmul.f32 %v48_v5, %v48_v5  ;;  %v51_v8 = vmul.f32 %v49_v6, %v49_v6  ;;  %v84_v28 = vsub.s32 0, %v83_v27  ;;  %v88_v29 = vsub.s32 1, %v83_v27 }
  0x2b   :  { %v53_v9 = vrot.slane %v50_v7, 4  ;;  %v59_v10 = vrot.slane %v51_v8, 4 }
  0x2d   :  { %v54_v11 = vadd.f32 %v53_v9, %v50_v7  ;;  %v60_v12 = vadd.f32 %v59_v10, %v51_v8  ;;  %v52_v20 = vld [vmem:[#allocation2] sm:$0x3] }
  0x2f   :  { %v55_v13 = vrot.slane %v54_v11, 2  ;;  %v61_v14 = vrot.slane %v60_v12, 2 }
  0x31   :  { %v56_v15 = vadd.f32 %v55_v13, %v54_v11  ;;  %v62_v16 = vadd.f32 %v61_v14, %v60_v12 }
  0x33   :  { %v57_v17 = vrot.slane %v56_v15, 1  ;;  %v63_v18 = vrot.slane %v62_v16, 1 }
  0x35   :  { %v58_v19 = vadd.f32 %v57_v17, %v56_v15  ;;  %v64_v21 = vadd.f32 %v63_v18, %v62_v16 }
  0x37   :  { %v68_v22 = vsel %vm67_vm0, %v64_v21, %v58_v19 }
  0x38   :  { %v70_v23 = vadd.f32 %v68_v22, %v52_v20 }
  0x3a   :  { %71 = vst [vmem:[#allocation2] sm:$0x3] %v70_v23 }
  0x41   :  { %v75_v24 = vld [vmem:[#allocation2] sm:$0x3] }
  0x42   :  { %v77_v25 = vsel %vm76_vm1, %v75_v24, 0.0 }
  0x43   :  { %78 = vadd.xlane.f32.xlu0 %v77_v25 }
  0xd0   :  { %v79_v30 = vpop.xlane.xlu0 %78 }
  0xd1   :  { %v80_v31 = vmul.f32 0.0009765625, %v79_v30 }
  0xd3   :  { %v85_v32 = vrot.slane %v80_v31, %v84_v28  ;;  %v89_v33 = vrot.slane %v80_v31, %v88_v29 }
  0xd5   :  { %93 = vst.msk [vmem:[%s206_s2] sm:$0x1] %vm92_vm2, %v85_v32  ;;  %94 = vst.msk [vmem:[%s206_s2 + $0x1] sm:$0x1] %vm92_vm2, %v89_v33 }
  0xd6   :  { %99 = vsyncpa [#allocation4], 1 }
  0xd7   :  { %100 = vsyncpa [#allocation6], 1 }

</bundles_post_ra>
